<compile_context>
chip_gen: v7x
topology: tpu7x:2x2x1
jax: 0.10.0
libtpu: 0.0.40
codegen_flags: <defaults>
</compile_context>

<pallas_src>
import functools
import math

import jax
import jax.numpy as jnp
from jax.experimental import pallas as pl
from jax.experimental.pallas import tpu as pltpu

_LANE = 128
_NEG = -1e30  # large-negative mask value (avoids -inf arithmetic)
_MIB = 1024 * 1024


def _round_up(v, m):
    return ((v + m - 1) // m) * m


@functools.lru_cache(maxsize=1)
def _vmem_limit_bytes():
    """Generation-aware scoped-VMEM request (per TensorCore)."""
    try:
        cap = int(pltpu.get_tpu_info().vmem_capacity_bytes)
    except Exception:
        cap = 64 * _MIB  # conservative fallback (v7x-sized)
    # ~0.6x of physical: ~76 MiB on v5e/v6e (128 MiB), ~38 MiB on v7x (64 MiB),
    # leaving headroom for Mosaic internal scratch.
    return max(32 * _MIB, min(96 * _MIB, int(cap * 0.6)))


def _choose_block_tokens(d, x_itemsize, wt_bytes, e_pad, top_k, vmem_limit):
    """Token tile sized against the actual VMEM budget.

    Per-token VMEM bytes:
      x (2 pipeline buffers)           : 2 * d * itemsize
      f32 intermediates over experts   : ~3 * e_pad * 4  (logits, masked copy, iota)
      outputs (idx + weight, 2 buffers): 4 * top_k * 4
    """
    per_token = 2 * d * x_itemsize + 3 * e_pad * 4 + 4 * top_k * 4
    avail = vmem_limit - wt_bytes - 2 * _MIB  # slack for compiler scratch
    bt = max(8, avail // max(1, per_token))
    bt = int(min(bt, 2048))
    return max(8, bt - bt % 8)


def prepare_gate_weight(weight, dtype=None):
    """One-time preparation of the gate weight: transpose + zero-pad experts to
    a multiple of 128 so they sit lane-dense on the fast axis.

    Callers should cache the result (e.g. at checkpoint-load time) instead of
    rebuilding it every forward call.  Pass `dtype` matching the activation
    dtype so both MXU operands agree (avoids an in-kernel cast pass).
    """
    n_experts, d = weight.shape
    if dtype is not None:
        weight = weight.astype(dtype)
    e_pad = _round_up(n_experts, _LANE)
    wt = jnp.pad(weight.T, ((0, 0), (0, e_pad - n_experts)))  # [D, E_pad]
    return wt


def _moe_gate_kernel(x_ref, wt_ref, idx_ref, w_ref, *, top_k, norm_topk_prob,
                     n_experts):
    # x_ref  : [TM, D]      token tile (native dtype, streamed/pipelined)
    # wt_ref : [D, E_pad]   gate weight (whole array, resident in VMEM)
    # idx_ref: [TM, K]      int32 selected expert indices
    # w_ref  : [TM, K]      f32 selected gate weights
    logits = jnp.dot(x_ref[...], wt_ref[...],
                     preferred_element_type=jnp.float32)        # [TM, E_pad]

    tm, e_pad = logits.shape
    expert_ids = jax.lax.broadcasted_iota(jnp.int32, (tm, e_pad), 1)
    if e_pad > n_experts:
        # mask out the zero-padded (non-existent) expert columns
        logits = jnp.where(expert_ids < n_experts, logits, _NEG)

    # Iterative top-k directly on logits (softmax is monotone -> same indices).
    s = logits
    vals, idxs = [], []
    for _ in range(top_k):
        v = jnp.max(s, axis=-1, keepdims=True)                  # [TM, 1]
        # lowest-index argmax via masked min over the iota
        i = jnp.min(jnp.where(s == v, expert_ids, e_pad),
                    axis=-1, keepdims=True).astype(jnp.int32)   # [TM, 1]
        vals.append(v)
        idxs.append(i)
        # Mask ONLY the selected column; masking all `s == v` columns would
        # consume ties in one step and diverge from torch.topk / lax.top_k.
        s = jnp.where(expert_ids == i, _NEG, s)

    topk_v = jnp.concatenate(vals, axis=-1) if top_k > 1 else vals[0]
    topk_i = jnp.concatenate(idxs, axis=-1) if top_k > 1 else idxs[0]

    m = vals[0]                                                 # row max logit
    ew = jnp.exp(topk_v - m)                                    # unnormalized

    if top_k > 1 and norm_topk_prob:
        # Full softmax denominator cancels under renormalization:
        # normalize over only the K selected values (numerically exact).
        topk_w = ew / (jnp.sum(ew, axis=-1, keepdims=True) + 1e-20)
    else:
        # True softmax probabilities: exact divide by the full-row denominator
        # (one [TM,1] column -- cost is fully hidden under the x DMA).
        denom = jnp.sum(jnp.exp(logits - m), axis=-1, keepdims=True)
        topk_w = ew / denom

    idx_ref[...] = topk_i
    w_ref[...] = topk_w.astype(w_ref.dtype)


@functools.partial(
    jax.jit,
    static_argnames=("n_experts", "top_k", "norm_topk_prob", "block_tokens",
                     "compute_dtype"))
def moe_gate_forward(hidden_states, gate_weight_t, *, n_experts, top_k,
                     norm_topk_prob=True, block_tokens=None,
                     compute_dtype=None):
    """JAX/Pallas equivalent of MoEGate.forward (eval mode).

    hidden_states : [bsz, seq_len, dim]
    gate_weight_t : [dim, E_pad]   prepared once via prepare_gate_weight()
    returns (topk_idx [N, K] int32, topk_weight [N, K] f32, aux_loss=0.0)
    """
    bsz, seq_len, h = hidden_states.shape
    x = hidden_states.reshape(-1, h)                   # [N, D] (no copy)
    if compute_dtype is not None:
        # Optional bf16 compute path (halves the dominant x DMA traffic,
        # biggest win on v5e's 0.82 TB/s HBM). Near-tie selections may flip,
        # so this is opt-in.
        x = x.astype(compute_dtype)
    n_tokens, d = x.shape
    wt = gate_weight_t
    if wt.dtype != x.dtype:
        # Keep both MXU operands in the same dtype (prefer preparing the
        # weight in the activation dtype to avoid this per-call cast).
        wt = wt.astype(x.dtype)
    e_pad = wt.shape[1]
    assert wt.shape[0] == d and e_pad % _LANE == 0 and e_pad >= n_experts

    vmem_limit = _vmem_limit_bytes()
    wt_bytes = d * e_pad * wt.dtype.itemsize

    # ---- token tile selection (no activation padding; ragged last tile) ----
    if block_tokens is None:
        tm = _choose_block_tokens(d, x.dtype.itemsize, wt_bytes, e_pad, top_k,
                                  vmem_limit)
    else:
        tm = int(block_tokens)
    if n_tokens <= 8:
        tm = n_tokens                                   # single full block
    else:
        tm = min(max(8, tm - tm % 8), _round_up(n_tokens, 8))
        if tm >= n_tokens:
            # Guarantee >= 2 token tiles: both v7x TensorCores get work and
            # the input DMA overlaps compute even for small-batch decode.
            tm = max(8, _round_up((n_tokens + 1) // 2, 8))

    n_tiles = pl.cdiv(n_tokens, tm)

    kernel = functools.partial(_moe_gate_kernel, top_k=top_k,
                               norm_topk_prob=norm_topk_prob,
                               n_experts=n_experts)

    topk_idx, topk_weight = pl.pallas_call(
        kernel,
        grid=(n_tiles,),
        in_specs=[
            # streamed, double-buffered token tiles
            pl.BlockSpec((tm, d), lambda i: (i, 0)),
            # resident gate weight: whole array, single VMEM buffer
            pl.BlockSpec(memory_space=pltpu.MemorySpace.VMEM),
        ],
        out_specs=(
            pl.BlockSpec((tm, top_k), lambda i: (i, 0)),
            pl.BlockSpec((tm, top_k), lambda i: (i, 0)),
        ),
        out_shape=(
            jax.ShapeDtypeStruct((n_tokens, top_k), jnp.int32),
            jax.ShapeDtypeStruct((n_tokens, top_k), jnp.float32),
        ),
        compiler_params=pltpu.CompilerParams(
            dimension_semantics=("parallel",),           # megacore on v7x
            vmem_limit_bytes=vmem_limit,
        ),
    )(x, wt)

    # TODO(synk): training-time aux_loss (seq_aux / scatter_add branch) not
    # implemented; eval path returns 0 exactly as the PyTorch module does.
    aux_loss = 0.0
    return topk_idx, topk_weight, aux_loss


def _reference(hidden_states, weight, *, top_k, norm_topk_prob=True):
    """Plain-JAX reference of the same forward (for correctness check)."""
    bsz, seq_len, h = hidden_states.shape
    x = hidden_states.reshape(-1, h).astype(jnp.float32)
    logits = x @ weight.astype(jnp.float32).T
    scores = jax.nn.softmax(logits, axis=-1)
    topk_w, topk_i = jax.lax.top_k(scores, top_k)
    if top_k > 1 and norm_topk_prob:
        topk_w = topk_w / (jnp.sum(topk_w, axis=-1, keepdims=True) + 1e-20)
    return topk_i.astype(jnp.int32), topk_w


if __name__ == "__main__":
    # Small config consistent with the module: dim=32, 8 routed experts, top-2.
    batch, seq, dim = 2, 8, 32
    n_routed_experts = 8
    top_k = 2

    key = jax.random.PRNGKey(0)
    k_x, k_w, k_x2 = jax.random.split(key, 3)

    hidden_states = jax.random.normal(k_x, (batch, seq, dim), dtype=jnp.float32)

    # Kaiming uniform init (a=sqrt(5)) on weight [n_experts, dim]:
    # bound = gain * sqrt(3 / fan_in) with gain = sqrt(2/(1+a^2)) => 1/sqrt(fan_in)
    bound = 1.0 / math.sqrt(dim)
    weight = jax.random.uniform(
        k_w, (n_routed_experts, dim), dtype=jnp.float32, minval=-bound,
        maxval=bound)

    # One-time weight preparation (would be cached by the caller in practice).
    wt = prepare_gate_weight(weight, dtype=hidden_states.dtype)

    # --- norm_topk_prob=True path (full-softmax denominator cancels) ---
    topk_idx, topk_weight, aux_loss = moe_gate_forward(
        hidden_states, wt, n_experts=n_routed_experts, top_k=top_k,
        norm_topk_prob=True)
    jax.block_until_ready((topk_idx, topk_weight))

    ref_idx, ref_w = _reference(hidden_states, weight, top_k=top_k,
                                norm_topk_prob=True)
    assert topk_idx.shape == (batch * seq, top_k)
    assert topk_weight.shape == (batch * seq, top_k)
    assert bool(jnp.all(topk_idx == ref_idx))
    assert bool(jnp.allclose(topk_weight, ref_w, atol=1e-5, rtol=1e-5))
    assert aux_loss == 0.0

    # --- norm_topk_prob=False path (exact divide -> tight tolerance) ---
    idx2, w2, _ = moe_gate_forward(
        hidden_states, wt, n_experts=n_routed_experts, top_k=top_k,
        norm_topk_prob=False)
    jax.block_until_ready((idx2, w2))
    ref_idx2, ref_w2 = _reference(hidden_states, weight, top_k=top_k,
                                  norm_topk_prob=False)
    assert bool(jnp.all(idx2 == ref_idx2))
    assert bool(jnp.allclose(w2, ref_w2, atol=1e-5, rtol=1e-5))

    # --- ragged token count (exercises the clamped last tile, no padding) ---
    hs_ragged = jax.random.normal(k_x2, (3, 5, dim), dtype=jnp.float32)
    idx3, w3, _ = moe_gate_forward(
        hs_ragged, wt, n_experts=n_routed_experts, top_k=top_k,
        norm_topk_prob=True)
    jax.block_until_ready((idx3, w3))
    ref_idx3, ref_w3 = _reference(hs_ragged, weight, top_k=top_k,
                                  norm_topk_prob=True)
    assert idx3.shape == (15, top_k)
    assert bool(jnp.all(idx3 == ref_idx3))
    assert bool(jnp.allclose(w3, ref_w3, atol=1e-5, rtol=1e-5))

    print("KERNEL_OK")
</pallas_src>

<mosaic_0001>
module attributes {stable_mosaic.version = 11 : i64} {
  func.func @_moe_gate_kernel(%arg0: i32, %arg1: memref<8x32xf32, #tpu.memory_space<vmem>>, %arg2: memref<32x128xf32, #tpu.memory_space<vmem>>, %arg3: memref<8x2xi32, #tpu.memory_space<vmem>>, %arg4: memref<8x2xf32, #tpu.memory_space<vmem>>) attributes {dimension_semantics = [#tpu.dimension_semantics<parallel>], iteration_bounds = array<i64: 2>, scalar_prefetch = 0 : i64, scratch_operands = 0 : i64, tpu.core_type = #tpu.core_type<tc>, window_params = [{transform_indices = @transform_0, window_bounds = array<i64: 8, 32>}, {pipeline_mode = #tpu.pipeline_mode<synchronous>, transform_indices = @transform_1, window_bounds = array<i64: 32, 128>}, {transform_indices = @transform_2, window_bounds = array<i64: 8, 2>}, {transform_indices = @transform_3, window_bounds = array<i64: 8, 2>}]} {
    %c0 = arith.constant 0 : index
    %c0_0 = arith.constant 0 : index
    %0 = vector.load %arg1[%c0, %c0_0] : memref<8x32xf32, #tpu.memory_space<vmem>>, vector<8x32xf32>
    %c0_1 = arith.constant 0 : index
    %c0_2 = arith.constant 0 : index
    %1 = vector.load %arg2[%c0_1, %c0_2] : memref<32x128xf32, #tpu.memory_space<vmem>>, vector<32x128xf32>
    %cst = arith.constant dense<0.000000e+00> : vector<8x128xf32>
    %2 = tpu.matmul %0, %1, %cst {dimension_numbers = #tpu.dot_dimension_numbers<[1], [0], [0], [1], [0, 0, 1, 1], [], []>} : vector<8x32xf32>, vector<32x128xf32>, vector<8x128xf32> -> vector<8x128xf32>
    %3 = tpu.iota {dimensions = array<i32: 1>} : vector<8x128xi32>
    %c8_i32 = arith.constant 8 : i32
    %4 = vector.broadcast %c8_i32 : i32 to vector<8x128xi32>
    %5 = arith.cmpi slt, %3, %4 : vector<8x128xi32>
    %cst_3 = arith.constant -1.000000e+30 : f32
    %6 = vector.broadcast %cst_3 : f32 to vector<8x128xf32>
    %7 = arith.select %5, %2, %6 : vector<8x128xi1>, vector<8x128xf32>
    %cst_4 = arith.constant dense<0xFF800000> : vector<8xf32>
    %8 = vector.multi_reduction <maximumf>, %7, %cst_4 [1] : vector<8x128xf32> to vector<8xf32>
    %9 = vector.shape_cast %8 : vector<8xf32> to vector<8x1xf32>
    %10 = vector.broadcast %9 : vector<8x1xf32> to vector<8x128xf32>
    %11 = arith.cmpf oeq, %7, %10 : vector<8x128xf32>
    %c128_i32 = arith.constant 128 : i32
    %12 = vector.broadcast %c128_i32 : i32 to vector<8x128xi32>
    %13 = arith.select %11, %3, %12 : vector<8x128xi1>, vector<8x128xi32>
    %cst_5 = arith.constant dense<2147483647> : vector<8xi32>
    %14 = vector.multi_reduction <minsi>, %13, %cst_5 [1] : vector<8x128xi32> to vector<8xi32>
    %15 = vector.shape_cast %14 : vector<8xi32> to vector<8x1xi32>
    %16 = vector.broadcast %15 : vector<8x1xi32> to vector<8x128xi32>
    %17 = arith.cmpi eq, %3, %16 : vector<8x128xi32>
    %cst_6 = arith.constant -1.000000e+30 : f32
    %18 = vector.broadcast %cst_6 : f32 to vector<8x128xf32>
    %19 = arith.select %17, %18, %7 : vector<8x128xi1>, vector<8x128xf32>
    %cst_7 = arith.constant dense<0xFF800000> : vector<8xf32>
    %20 = vector.multi_reduction <maximumf>, %19, %cst_7 [1] : vector<8x128xf32> to vector<8xf32>
    %21 = vector.shape_cast %20 : vector<8xf32> to vector<8x1xf32>
    %22 = vector.broadcast %21 : vector<8x1xf32> to vector<8x128xf32>
    %23 = arith.cmpf oeq, %19, %22 : vector<8x128xf32>
    %c128_i32_8 = arith.constant 128 : i32
    %24 = vector.broadcast %c128_i32_8 : i32 to vector<8x128xi32>
    %25 = arith.select %23, %3, %24 : vector<8x128xi1>, vector<8x128xi32>
    %cst_9 = arith.constant dense<2147483647> : vector<8xi32>
    %26 = vector.multi_reduction <minsi>, %25, %cst_9 [1] : vector<8x128xi32> to vector<8xi32>
    %27 = vector.shape_cast %26 : vector<8xi32> to vector<8x1xi32>
    %28 = tpu.concatenate %9, %21 in 1 : vector<8x1xf32>, vector<8x1xf32> -> vector<8x2xf32>
    %29 = tpu.concatenate %15, %27 in 1 : vector<8x1xi32>, vector<8x1xi32> -> vector<8x2xi32>
    %30 = vector.broadcast %9 : vector<8x1xf32> to vector<8x2xf32>
    %31 = arith.subf %28, %30 : vector<8x2xf32>
    %32 = math.exp %31 : vector<8x2xf32>
    %cst_10 = arith.constant dense<0.000000e+00> : vector<8xf32>
    %33 = vector.multi_reduction <add>, %32, %cst_10 [1] : vector<8x2xf32> to vector<8xf32>
    %34 = vector.shape_cast %33 : vector<8xf32> to vector<8x1xf32>
    %cst_11 = arith.constant 9.99999968E-21 : f32
    %35 = vector.broadcast %cst_11 : f32 to vector<8x1xf32>
    %36 = arith.addf %34, %35 : vector<8x1xf32>
    %37 = vector.broadcast %36 : vector<8x1xf32> to vector<8x2xf32>
    %38 = arith.divf %32, %37 : vector<8x2xf32>
    %c0_12 = arith.constant 0 : index
    %c0_13 = arith.constant 0 : index
    %39 = vector.load %arg3[%c0_12, %c0_13] : memref<8x2xi32, #tpu.memory_space<vmem>>, vector<8x2xi32>
    tpu.vector_store %arg3[%c0_12, %c0_13], %29 {strides = array<i32>} : memref<8x2xi32, #tpu.memory_space<vmem>>, vector<8x2xi32>,
    %c0_14 = arith.constant 0 : index
    %c0_15 = arith.constant 0 : index
    %40 = vector.load %arg4[%c0_14, %c0_15] : memref<8x2xf32, #tpu.memory_space<vmem>>, vector<8x2xf32>
    tpu.vector_store %arg4[%c0_14, %c0_15], %38 {strides = array<i32>} : memref<8x2xf32, #tpu.memory_space<vmem>>, vector<8x2xf32>,
    return
  }
  func.func @transform_0(%arg0: i32) -> (i32, i32) {
    %c0_i32 = arith.constant 0 : i32
    %c0_i32_0 = arith.constant 0 : i32
    return %arg0, %c0_i32 : i32, i32
  }
  func.func @transform_1(%arg0: i32) -> (i32, i32) {
    %c0_i32 = arith.constant 0 : i32
    %c0_i32_0 = arith.constant 0 : i32
    %c0_i32_1 = arith.constant 0 : i32
    return %c0_i32, %c0_i32_0 : i32, i32
  }
  func.func @transform_2(%arg0: i32) -> (i32, i32) {
    %c0_i32 = arith.constant 0 : i32
    %c0_i32_0 = arith.constant 0 : i32
    return %arg0, %c0_i32 : i32, i32
  }
  func.func @transform_3(%arg0: i32) -> (i32, i32) {
    %c0_i32 = arith.constant 0 : i32
    %c0_i32_0 = arith.constant 0 : i32
    return %arg0, %c0_i32 : i32, i32
  }
}

</mosaic_0001>

<bundles_post_ra>
// kernel: moe_gate_forward.1
= control target key start
LH: loop header
LB: loop body
LE: loop exit
PB: predicated region body
PF: predicated region fallthrough
CT: control target
= control target key end

     0   :  { %9 = vsyncpa [#allocation3], 0  ;;  %s821_s0 = inlined_call_operand.hbm [shape: f32[16,32], index: 0, kind: input, shape index: {}]   ;;  %s822_s1 = inlined_call_operand.hbm [shape: f32[32,128], index: 1, kind: input, shape index: {}]   ;;  %s823_s2 = inlined_call_operand.vmem [shape: s32[16,2], index: 2, kind: output, shape index: {0}]   ;;  %s824_s3 = inlined_call_operand.vmem [shape: f32[16,2], index: 3, kind: output, shape index: {1}]  }
   0x1   :  { %11 = vsyncpa [#allocation3 + $0x1], 0 }
   0x2   :  { %12 = vsyncpa [#allocation5], 0  ;;  %s674_s12 = smov 0   ;;  %s676_s13 = smov 0  }
   0x3   :  { %s678_s14 = smov 0   ;;  %s680_s15 = smov 0  }
   0x4 LB: > { %s693_s16 = sadd.s32 4294967295, %s645_s15   ;;  %p38_p0 = scmp.ne.s32.totalorder %s637_s13, %s633_s12  ;;  %s645_s15 = sphi %s680_s15, %s839_s15   ;;  %s641_s14 = sphi %s678_s14, %s838_s14   ;;  %s637_s13 = sphi %s676_s13, %s837_s13   ;;  %s633_s12 = sphi %s674_s12, %s836_s12  }
   0x5   : > { %p825_p1 = scmp.eq.s32.totalorder %s693_s16, 0  ;;  %p455_p2 = scmp.ge.s32.totalorder %s645_s15, 1 }
   0x6   : > { %p122_p3 = scmp.lt.s32.totalorder %s645_s15, 3  ;;  %s647_s19 = smov [#allocation4]  }
   0x7   : > { %p701_p4 = por %p825_p1, %p38_p0  ;;  %s134_s20 = sshll.u32 %s647_s19, 4  ;;  %s135_s20 = int_to_ptr.vmem [resolvable:$true] %s134_s20 }
   0x8   : > { %p705_p5 = pnand %p455_p2, %p122_p3  ;;  %s718_s22 = sadd.s32 1, %s645_s15  }
   0x9   : > { %s828_s17 = scalar_select %p701_p4, 1, 0 }
   0xa   : > { %s829_s18 = scalar_select %p705_p5, 1, 0 }
   0xb   : > { %p496_p6 = pneg %p705_p5  ;;  %s25_s23 = sadd.s32 1, %s641_s14 }
   0xc   : > { %s22_s24 = ssub.s32 %s645_s15, %s718_s22  ;;  %s549_s27 = scalar_lea.hbm %s822_s1, 512 }
   0xd   : > { %p713_p7 = pnand %p496_p6, %p825_p1  ;;  %p550_p8 = scmp.ne.s32.totalorder %s822_s1, %s549_s27 }
   0xe   : > { %p556_p12 = scmp.lt.u32.totalorder %s549_s27, %s822_s1 }
   0xf   : > { %p551_p9 = pneg %p713_p7 }
  0x11   : > { %p552_p10 = pnand %p551_p9, %p550_p8 }
  0x13   : > { %p553_p11 = pneg %p552_p10 }
  0x15   : > { %p558_p13 = pnand %p556_p12, %p553_p11 }
  0x17   : > { %561 = shalt.err (!%p558_p13)
}
  0x18   : > { %s562_s5 = scalar_lea.vmem %s135_s20, 512  ;;  %p570_p6 = scmp.lt.s32.totalorder %s135_s20, %s135_s20 }
  0x19   : > { %p563_p0 = scmp.ne.s32.totalorder %s135_s20, %s562_s5  ;;  %p571_p1 = scmp.lt.s32.totalorder %s562_s5, %s562_s5 }
  0x1b   : > { %p565_p2 = pnand %p563_p0, %p551_p9  ;;  %p572_p4 = por %p571_p1, %p570_p6 }
  0x1d   : > { %p566_p3 = pneg %p565_p2 }
  0x1f   : > { %p573_p5 = pnand %p572_p4, %p566_p3 }
  0x21   : > { %576 = shalt.err (!%p573_p5)
}
  0x22   : > { %s648_s6 = smov 128   ;;  %s649_s7 = smov 8  }
  0x23   : > { %499 = dma.hbm_to_vmem [thread:$0]  (!%p713_p7), %s822_s1, 512, %s135_s20, [#allocation5], %s648_s6, %s648_s6, %s649_s7  }
  0x24   : > { %p23_p8 = scmp.eq.s32.totalorder %s22_s24, 0  ;;  %p32_p9 = scmp.ne.s32.totalorder %s641_s14, %s637_s13 }
  0x25   : > { %p33_p1 = scmp.eq.s32.totalorder %s645_s15, 0  ;;  %p505_p4 = scmp.lt.s32.totalorder %s645_s15, 2 }
  0x26   : > { %s744_s10 = scalar_select %p23_p8, %s641_s14, %s25_s23  }
  0x27   : > { %p34_p5 = por %p33_p1, %p32_p9  ;;  %s148_s11 = sand.u32 1, %s641_s14  }
  0x28   : > { %s458_s12 = sshll.u32 %s148_s11, 3  ;;  %s459_s19 = sshll.u32 %s645_s15, 7 }
  0x29   : > { %s751_s27 = scalar_lea.hbm %s821_s0, %s459_s19  ;;  %s152_s20 = scalar_lea.vmem [#allocation2], %s458_s12 }
  0x2a   : > { %s159_s21 = sshll.u32 %s152_s20, 4  ;;  %p755_p7 = pnand %p505_p4, %p34_p5  ;;  %s753_s21 = int_to_ptr.vmem [resolvable:$true] %s159_s21 }
  0x2b   : > { %s149_s15 = scalar_lea.sflag [#allocation3], %s148_s11  ;;  %s577_s24 = scalar_lea.hbm %s751_s27, 128 }
  0x2c   : > { %p578_p10 = scmp.ne.s32.totalorder %s751_s27, %s577_s24  ;;  %p579_p11 = pneg %p755_p7 }
  0x2d   : > { %s582_s30 = scalar_lea.hbm %s821_s0, 256  ;;  %p583_p0 = scmp.lt.u32.totalorder %s751_s27, %s821_s0 }
  0x2e   : > { %p580_p12 = pnand %p579_p11, %p578_p10  ;;  %p584_p2 = scmp.lt.u32.totalorder %s582_s30, %s577_s24 }
  0x2f   : > { %p586_p6 = scmp.lt.u32.totalorder %s577_s24, %s751_s27 }
  0x30   : > { %p581_p13 = pneg %p580_p12  ;;  %p585_p3 = por %p584_p2, %p583_p0 }
  0x32   : > { %p587_p8 = por %p586_p6, %p585_p3 }
  0x34   : > { %p588_p9 = pnand %p587_p8, %p581_p13 }
  0x36   : > { %591 = shalt.err (!%p588_p9)
}
  0x37   : > { %s592_s6 = scalar_lea.vmem %s753_s21, 128  ;;  %s650_s7 = smov [#allocation2]  }
  0x38   : > { %p593_p1 = scmp.ne.s32.totalorder %s753_s21, %s592_s6  ;;  %s597_s8 = sshll.u32 %s650_s7, 4  ;;  %s598_s8 = int_to_ptr.vmem [resolvable:$false] %s597_s8 }
  0x39   : > { %s599_s9 = scalar_lea.vmem %s598_s8, 256  ;;  %p600_p10 = scmp.lt.s32.totalorder %s753_s21, %s598_s8 }
  0x3a   : > { %p595_p4 = pnand %p593_p1, %p579_p11  ;;  %p601_p12 = scmp.lt.s32.totalorder %s599_s9, %s592_s6 }
  0x3c   : > { %p596_p5 = pneg %p595_p4  ;;  %p602_p0 = por %p601_p12, %p600_p10 }
  0x3e   : > { %p603_p2 = pnand %p602_p0, %p596_p5 }
  0x40   : > { %606 = shalt.err (!%p603_p2)
}
  0x41   : > { %503 = dma.hbm_to_vmem [thread:$0]  (!%p755_p7), %s751_s27, 128, %s753_s21, %s149_s15  }
  0x42   : > { %p832_p13 = scmp.ne.s32.totalorder %s829_s18, 0 }
  0x43   : > { %s170_s11 = sand.u32 (!%p832_p13), 1, %s637_s13   ;;  %p833_p11 = scmp.ne.s32.totalorder (!%p832_p13), %s828_s17, 0 }
  0x44   : > { %168 = sbr.rel (%p832_p13) target bundleno = 1182 (0x49e), region = 28  ;;  %s461_s12 = sshll.u32 (!%p832_p13), %s170_s11, 3 }
  0x45   : > { %s171_s19 = scalar_lea.sflag (!%p832_p13), [#allocation3], %s170_s11  ;;  %s174_s25 = scalar_lea.vmem (!%p832_p13), [#allocation2], %s461_s12 }
  0x4b   : > { %624 = dma.done.wait (%p833_p11), %s171_s19, 128  }
  0x4c   : > { %626 = vsyncadd (%p833_p11), %s171_s19, 4294967168  ;;  %p834_p3 = scmp.eq.s32.totalorder %s693_s16, 0 }
  0x4e   : > { %628 = dma.done.wait (%p834_p3), [#allocation5], 512   ;;  %p835_p6 = pmov %p834_p3 }
  0x4f   : > { %v651_v0 = vmov 0.0|0.0   ;;  %vm652_vm0 = vmmov 0   ;;  %v653_v1 = vmov 0.0   ;;  %v213_v2 = vld [vmem:[#allocation4] sm:$0xff]  ;;  %v214_v3 = vld [vmem:[#allocation4 + $0x8] sm:$0xff]  ;;  %v215_v4 = vld [vmem:[#allocation4 + $0x10] sm:$0xff]  ;;  %v291_v9 = vlaneseq }
  0x50   : > { %630 = vsyncadd (%p835_p6), [#allocation5], 4294966784  ;;  %484 = vmatprep.subr.bf16.mxu0 %v651_v0  ;;  %481 = vmatprep.mubr.msk.f32.mxu0 %vm652_vm0, %v653_v1  ;;  %v485_v5 = vpack.c.bf16 %v214_v3, %v213_v2  ;;  %v216_v6 = vld [vmem:[#allocation4 + $0x18] sm:$0xff]  ;;  %vm217_vm1 = vcmask 261120   ;;  %vm333_vm6 = vcmask 7168   ;;  %vm339_vm8 = vcmask 15360  }
  0x51   : > { %v488_v7 = vpack.c.bf16 %v216_v6, %v215_v4  ;;  %v212_v8 = vld [vmem:[%s174_s25] sm:$0xff]  ;;  %v292_v10 = vand.u32 127, %v291_v9  ;;  %p204_p7 = scmp.lt.s32.totalorder %s693_s16, 1 }
  0x52   : > { %486 = vmatpush3.bf16.msra.mxu0 %v485_v5 }
  0x53   : > { %487 = vmatprep.subr.bf16.mxu0 %v651_v0  ;;  %vm293_vm2 = vcmp.lt.s32.totalorder %v292_v10, 8  ;;  %s841_s16 = smov (!%p204_p7, %s693_s16), 1 }
  0x54   : > { %s463_s17 = sshll.u32 %s841_s16, 3 }
  0x55   : > { %s211_s27 = scalar_lea.vmem %s824_s3, %s463_s17  ;;  %s207_s23 = scalar_lea.vmem %s823_s2, %s463_s17 }
  0x56   : > { %489 = vmatpush3.bf16.msra.mxu0 %v488_v7 }
  0x59   : > { %482 = vmatmul.mubr.msk.f32.vlgmr.msra.gmra.mrb[0].mxu0 %vm217_vm1, %v212_v8 }
 0x12c   : > { %v287_v11 = vpop.f32.mrb[0].mxu0 }
 0x12d   : > { %v294_v12 = vsel %vm293_vm2, %v287_v11, -1e+30  ;;  %v483_v13 = vpop.f32.mrb[1].mxu0 }
 0x12e   : > { %295 = vmax.xlane.f32.xlu0 %v294_v12 }
 0x1bb   : > { %v296_v14 = vpop.xlane.xlu0 %295 }
 0x1bc   : > { %vm297_vm3 = vcmp.eq.f32.partialorder %v294_v12, %v296_v14 }
 0x1bd   : > { %v298_v15 = vsel %vm297_vm3, %v292_v10, 128 }
 0x1be   : > { %v300_v16 = vshra.s32 %v298_v15, 16  ;;  %v299_v18 = vand.u32 65535, %v298_v15 }
 0x1c0   : > { %v302_v17 = vcvt.s32.f32 %v300_v16  ;;  %v301_v20 = vcvt.s32.f32 %v299_v18 }
 0x1c2   : > { %303 = vmin.xlane.f32.xlu0 %v302_v17 }
 0x24f   : > { %v304_v19 = vpop.xlane.xlu0 %303 }
 0x250   : > { %vm305_vm4 = vcmp.eq.f32.partialorder %v302_v17, %v304_v19  ;;  %v310_v22 = vcvt.f32.s32 %v304_v19 }
 0x251   : > { %v306_v21 = vsel %vm305_vm4, %v301_v20, inf }
 0x252   : > { %307 = vmin.xlane.f32.xlu1 %v306_v21  ;;  %v311_v24 = vshll.u32 %v310_v22, 16 }
 0x2df   : > { %v308_v23 = vpop.xlane.xlu1 %307 }
 0x2e0   : > { %v309_v25 = vcvt.f32.s32 %v308_v23 }
 0x2e2   : > { %v312_v26 = vadd.s32 %v311_v24, %v309_v25 }
 0x2e4   : > { %vm313_vm5 = vcmp.eq.s32.totalorder %v292_v10, %v312_v26 }
 0x2e5   : > { %v314_v27 = vsel %vm313_vm5, -1e+30, %v294_v12 }
 0x2e6   : > { %315 = vmax.xlane.f32.xlu1 %v314_v27 }
 0x373   : > { %v316_v28 = vpop.xlane.xlu1 %315 }
 0x374   : > { %vm317_vm7 = vcmp.eq.f32.partialorder %v314_v27, %v316_v28  ;;  %v334_v29 = vsel %vm333_vm6, %v296_v14, %v316_v28 }
 0x375   : > { %v318_v30 = vsel %vm317_vm7, %v292_v10, 128  ;;  %v336_v31 = vsub.f32 %v334_v29, %v296_v14 }
 0x376   : > { %v320_v32 = vshra.s32 %v318_v30, 16  ;;  %v319_v37 = vand.u32 65535, %v318_v30 }
 0x377   : > { %v337_v33 = vmul.f32 1.442695, %v336_v31 }
 0x378   : > { %v322_v34 = vcvt.s32.f32 %v320_v32  ;;  %v321_v39 = vcvt.s32.f32 %v319_v37 }
 0x379   : > { %545 = vpow2.f32 %v337_v33 }
 0x37a   : > { %323 = vmin.xlane.f32.xlu0 %v322_v34 }
 0x383   : > { %v546_v35 = vpop.eup %545 }
 0x384   : > { %v340_v36 = vsel %vm339_vm8, %v546_v35, 0.0 }
 0x385   : > { %341 = vadd.xlane.f32.xlu1 %v340_v36 }
 0x407   : > { %v324_v38 = vpop.xlane.xlu0 %323 }
 0x408   : > { %vm325_vm9 = vcmp.eq.f32.partialorder %v322_v34, %v324_v38  ;;  %v330_v45 = vcvt.f32.s32 %v324_v38 }
 0x409   : > { %v326_v40 = vsel %vm325_vm9, %v321_v39, inf }
 0x40a   : > { %327 = vmin.xlane.f32.xlu0 %v326_v40  ;;  %v331_v47 = vshll.u32 %v330_v45, 16 }
 0x412   : > { %v342_v41 = vpop.xlane.xlu1 %341 }
 0x413   : > { %v343_v42 = vadd.f32 1e-20, %v342_v41 }
 0x415   : > { %547 = vrcp.f32 %v343_v42 }
 0x41f   : > { %v548_v43 = vpop.eup %547 }
 0x420   : > { %v345_v44 = vmul.f32 %v548_v43, %v546_v35 }
 0x422   : > { %347 = vst.msk [vmem:[%s211_s27] sm:$0xff] %vm339_vm8, %v345_v44 }
 0x497   : > { %v328_v46 = vpop.xlane.xlu0 %327 }
 0x498   : > { %v329_v48 = vcvt.f32.s32 %v328_v46 }
 0x49a   : > { %v332_v49 = vadd.s32 %v331_v47, %v329_v48 }
 0x49c   : > { %v335_v50 = vsel %vm333_vm6, %v312_v26, %v332_v49 }
 0x49d   : > { %346 = vst.msk [vmem:[%s207_s23] sm:$0xff] %vm339_vm8, %v335_v50 }
 0x49e PF: > { %p15_p8 = scmp.ge.s32.totalorder %s718_s22, 4   ;;  %s836_s12 = smov %s637_s13 }
 0x49f   : > { %s837_s13 = smov %s641_s14  ;;  %s838_s14 = smov %s744_s10 }
 0x4a0   : > { %s839_s15 = smov %s718_s22  ;;  %17 = sbr.rel (!%p15_p8) target bundleno = 4 (0x4), region = 84 }
 0x4a7   :  { %381 = vsyncpa [#allocation3], 1 }
 0x4a8   :  { %383 = vsyncpa [#allocation3 + $0x1], 1 }
 0x4a9   :  { %384 = vsyncpa [#allocation5], 1 }

</bundles_post_ra>
